<compile_context>
chip_gen: v7x
topology: tpu7x:2x2x1
jax: 0.10.0
libtpu: 0.0.40
codegen_flags: <defaults>
</compile_context>

<pallas_src>
import functools

import jax
import jax.numpy as jnp
from jax.experimental import pallas as pl
from jax.experimental.pallas import tpu as pltpu

_LANE = 128
_SUBLANE = 8
_BN_EPS = 1e-5
_NEG_INF = -1e30


def _pad_to(n, mult):
    return ((n + mult - 1) // mult) * mult


def _vmem_capacity_bytes():
    try:
        return int(pltpu.get_tpu_info().vmem_capacity_bytes)
    except Exception:
        return 64 * 1024 * 1024  # conservative default (v7x per-TC VMEM)


def _pick_batch_tile(n, pdims, num_layers, vmem_cap):
    """Batch tile sized against this generation's VMEM (double-buffered tiles)."""
    per_row = 1
    for i in range(num_layers):
        out_bytes = 4 if i == num_layers - 1 else 2   # final output is f32
        per_row = max(per_row, 2 * (pdims[i] * 2 + pdims[i + 1] * out_bytes))
    budget = vmem_cap // 2
    bt = max(_SUBLANE, (budget // per_row) // _SUBLANE * _SUBLANE)
    bt = min(bt, 2048)
    if bt >= 256:                       # MXU-friendly M on v6e/v7x
        bt = bt // 256 * 256
    bt = min(bt, _pad_to(n, _SUBLANE))  # never larger than the (padded) batch
    return bt


def _vmem_limit_bytes(bt, pdims, num_layers, vmem_cap):
    need = 0
    for i in range(num_layers):
        out_bytes = 4 if i == num_layers - 1 else 2
        w = pdims[i] * pdims[i + 1] * 2
        tiles = 2 * bt * pdims[i] * 2 + 2 * bt * pdims[i + 1] * out_bytes
        stats = (2 * pdims[i] + 2 * pdims[i + 1] + pdims[i + 1]) * 4
        need = max(need, w + tiles + stats)
    limit = max(2 * need + (4 << 20), 32 << 20)
    return int(min(limit, int(0.9 * vmem_cap)))


def _bn_relu(h, mean, ex2):
    """Training-mode BatchNorm1d (gamma=1, beta=0, biased var) + ReLU -> bf16."""
    var = ex2 - mean * mean
    scale = jax.lax.rsqrt(var + _BN_EPS)           # (1, D) row, EUP
    h = (h.astype(jnp.float32) - mean) * scale
    return jnp.maximum(h, 0.0).astype(jnp.bfloat16)


def _hidden_kernel(apply_bn, n_real, bt, *refs):
    """[BN(prev stats) -> ReLU ->] Linear (bf16 MXU) + per-feature stats accum.

    refs: ([mean_in, ex2_in], x, w, z_out, mean_out, ex2_out)
      x:        (bt, din_pad)      bf16 batch tile
      w:        (din_pad, dout_pad) bf16, VMEM-resident
      z_out:    (bt, dout_pad)     bf16 batch tile
      mean_out / ex2_out: (1, dout_pad) f32 resident accumulators
    """
    if apply_bn:
        mean_in, ex2_in, x_ref, w_ref, z_ref, mean_out, ex2_out = refs
    else:
        x_ref, w_ref, z_ref, mean_out, ex2_out = refs

    i = pl.program_id(0)

    h = x_ref[...]
    if apply_bn:
        h = _bn_relu(h, mean_in[...], ex2_in[...])

    z = jnp.dot(h, w_ref[...], preferred_element_type=jnp.float32)
    z_ref[...] = z.astype(z_ref.dtype)

    # Per-feature sum / sum-of-squares over the *real* rows of this tile via a
    # masked ones-row matmul (MXU) — keeps the XLU free and skips batch pad rows.
    row = jax.lax.broadcasted_iota(jnp.int32, (1, bt), 1) + i * bt
    mask = (row < n_real).astype(jnp.float32)       # (1, bt)
    inv_n = jnp.float32(1.0 / n_real)

    @pl.when(i == 0)
    def _():
        mean_out[...] = jnp.zeros_like(mean_out)
        ex2_out[...] = jnp.zeros_like(ex2_out)

    # NOTE: E[x^2]-E[x]^2 variance uses f32 accumulators; fine at these scales.
    mean_out[...] += jnp.dot(mask, z, preferred_element_type=jnp.float32) * inv_n
    ex2_out[...] += jnp.dot(mask, z * z, preferred_element_type=jnp.float32) * inv_n


def _final_kernel(apply_bn, *refs):
    """[BN(prev stats) -> ReLU ->] Linear + bias -> Softmax(dim=1).

    Pad columns of the bias are pre-set to -1e30 (pad weight columns are zero),
    so no runtime mask is needed before the softmax.
    """
    if apply_bn:
        mean_in, ex2_in, h_ref, w_ref, b_ref, out_ref = refs
    else:
        h_ref, w_ref, b_ref, out_ref = refs

    h = h_ref[...]
    if apply_bn:
        h = _bn_relu(h, mean_in[...], ex2_in[...])

    z = jnp.dot(h, w_ref[...], preferred_element_type=jnp.float32) + b_ref[...]
    m = jnp.max(z, axis=1, keepdims=True)
    e = jnp.exp(z - m)
    denom = jnp.sum(e, axis=1, keepdims=True)
    # Exact reciprocal so softmax rows sum to 1 (approx=True is only ~1e-3).
    out_ref[...] = (e * pl.reciprocal(denom, approx=False)).astype(out_ref.dtype)


def make_encoder(input_dim, embedding_dim, key):
    """Builds deterministic params and a jitted Pallas forward fn."""
    dims = [input_dim] + list(embedding_dim)
    num_layers = len(dims) - 1

    # f32 un-padded params mirroring nn.Linear default init (for reference).
    weights, biases = [], []
    for i in range(num_layers):
        key, wk, bk = jax.random.split(key, 3)
        bound = 1.0 / (dims[i] ** 0.5)
        w = jax.random.uniform(wk, (dims[i], dims[i + 1]), minval=-bound,
                               maxval=bound, dtype=jnp.float32)
        b = jax.random.uniform(bk, (1, dims[i + 1]), minval=-bound,
                               maxval=bound, dtype=jnp.float32)
        weights.append(w)
        biases.append(b)

    # Kernel params: feature dims zero-padded to 128-lane multiples, weights in
    # bf16.  Hidden biases dropped (cancelled by training-mode BN).  The final
    # bias stays f32 and carries the softmax pad mask in its pad columns.
    pdims = [_pad_to(d, _LANE) for d in dims]
    kweights = []
    for i in range(num_layers):
        wp = jnp.zeros((pdims[i], pdims[i + 1]), jnp.float32)
        wp = wp.at[:dims[i], :dims[i + 1]].set(weights[i])
        kweights.append(wp.astype(jnp.bfloat16))
    bp = jnp.full((1, pdims[-1]), _NEG_INF, jnp.float32)
    bp = bp.at[:, :dims[-1]].set(biases[-1])

    def forward(x):
        n = x.shape[0]
        vmem_cap = _vmem_capacity_bytes()
        bt = _pick_batch_tile(n, pdims, num_layers, vmem_cap)
        grid = (n + bt - 1) // bt
        n_pad = grid * bt
        vmem_limit = _vmem_limit_bytes(bt, pdims, num_layers, vmem_cap)

        # bf16, lane-padded input (pad rows/cols are zero).
        x_p = jnp.zeros((n_pad, pdims[0]), jnp.bfloat16)
        x_p = x_p.at[:n, :dims[0]].set(x.astype(jnp.bfloat16))

        h = x_p
        stats = None
        # Hidden layers: [BN(prev stats)+ReLU ->] Linear + stats accumulation.
        for i in range(num_layers - 1):
            din, dout = pdims[i], pdims[i + 1]
            apply_bn = i > 0
            in_specs, args = [], []
            if apply_bn:
                in_specs += [pl.BlockSpec((1, din), lambda t: (0, 0))] * 2
                args += list(stats)
            in_specs += [pl.BlockSpec((bt, din), lambda t: (t, 0)),
                         pl.BlockSpec((din, dout), lambda t: (0, 0))]
            args += [h, kweights[i]]
            h, mean, ex2 = pl.pallas_call(
                functools.partial(_hidden_kernel, apply_bn, n, bt),
                grid=(grid,),
                in_specs=in_specs,
                out_specs=(pl.BlockSpec((bt, dout), lambda t: (t, 0)),
                           pl.BlockSpec((1, dout), lambda t: (0, 0)),
                           pl.BlockSpec((1, dout), lambda t: (0, 0))),
                out_shape=(jax.ShapeDtypeStruct((n_pad, dout), jnp.bfloat16),
                           jax.ShapeDtypeStruct((1, dout), jnp.float32),
                           jax.ShapeDtypeStruct((1, dout), jnp.float32)),
                compiler_params=pltpu.CompilerParams(
                    # stats outputs accumulate across batch tiles
                    dimension_semantics=("arbitrary",),
                    vmem_limit_bytes=vmem_limit),
                cost_estimate=pl.CostEstimate(
                    flops=int(2 * n_pad * din * dout + 6 * n_pad * dout),
                    transcendentals=int(grid * din if apply_bn else 0),
                    bytes_accessed=int(n_pad * din * 2 + din * dout * 2
                                       + n_pad * dout * 2 + 2 * dout * 4)),
            )(*args)
            stats = (mean, ex2)

        # Final layer: BN(last stats)+ReLU -> Linear + bias -> Softmax(dim=1).
        din, dout = pdims[-2], pdims[-1]
        apply_bn = num_layers > 1
        in_specs, args = [], []
        if apply_bn:
            in_specs += [pl.BlockSpec((1, din), lambda t: (0, 0))] * 2
            args += list(stats)
        in_specs += [pl.BlockSpec((bt, din), lambda t: (t, 0)),
                     pl.BlockSpec((din, dout), lambda t: (0, 0)),
                     pl.BlockSpec((1, dout), lambda t: (0, 0))]
        args += [h, kweights[-1], bp]
        out_p = pl.pallas_call(
            functools.partial(_final_kernel, apply_bn),
            grid=(grid,),
            in_specs=in_specs,
            out_specs=pl.BlockSpec((bt, dout), lambda t: (t, 0)),
            out_shape=jax.ShapeDtypeStruct((n_pad, dout), jnp.float32),
            compiler_params=pltpu.CompilerParams(
                # purely row-wise -> shardable across TensorCores on v7x
                dimension_semantics=("parallel",),
                vmem_limit_bytes=vmem_limit),
            cost_estimate=pl.CostEstimate(
                flops=int(2 * n_pad * din * dout + 5 * n_pad * dout),
                transcendentals=int(n_pad * dout + grid * din),
                bytes_accessed=int(n_pad * din * 2 + din * dout * 2
                                   + n_pad * dout * 4 + dout * 4)),
        )(*args)
        # Slice back to real batch / output width (lane-dense store inside,
        # cheap XLA slice outside).
        return out_p[:n, :dims[-1]]

    return (weights, biases), (kweights, bp), jax.jit(forward), num_layers, dims


def _reference_forward_f32(x, weights, biases):
    """Exact PyTorch-semantics reference (f32, hidden biases included)."""
    h = x
    num_layers = len(weights)
    for i in range(num_layers):
        h = h @ weights[i] + biases[i]
        if i < num_layers - 1:
            mean = jnp.mean(h, axis=0, keepdims=True)
            var = jnp.mean((h - mean) ** 2, axis=0, keepdims=True)
            h = jnp.maximum((h - mean) / jnp.sqrt(var + _BN_EPS), 0.0)
    return jax.nn.softmax(h, axis=1)


def _reference_forward_mirror(x, weights, biases):
    """Mirrors the kernel arithmetic (bf16 matmuls/activations, f32 stats,
    E[x^2]-E[x]^2 variance, hidden biases dropped)."""
    h = x.astype(jnp.bfloat16)
    num_layers = len(weights)
    z = None
    for i in range(num_layers):
        z = jnp.dot(h, weights[i].astype(jnp.bfloat16),
                    preferred_element_type=jnp.float32)
        if i < num_layers - 1:
            mean = jnp.mean(z, axis=0, keepdims=True)
            var = jnp.mean(z * z, axis=0, keepdims=True) - mean * mean
            zq = z.astype(jnp.bfloat16).astype(jnp.float32)
            h = jnp.maximum((zq - mean) * jax.lax.rsqrt(var + _BN_EPS),
                            0.0).astype(jnp.bfloat16)
        else:
            z = z + biases[i]
    return jax.nn.softmax(z, axis=1)


if __name__ == "__main__":
    key = jax.random.PRNGKey(0)
    key, xk = jax.random.split(key)

    # Small shapes consistent with the module: batch=8, input_dim=32,
    # embedding_dim=[32, 16] -> Linear(32,32)+BN+ReLU, Linear(32,16), Softmax.
    # NOTE: at this toy size the kernel is pure fixed-overhead bound; tune only
    # at realistic shapes.
    batch = 8
    input_dim = 32
    embedding_dim = [32, 16]

    x = jax.random.normal(xk, (batch, input_dim), dtype=jnp.float32)

    (weights, biases), _, forward, num_layers, dims = make_encoder(
        input_dim, embedding_dim, key)

    out = jax.block_until_ready(forward(x))
    assert out.shape == (batch, embedding_dim[-1])

    # Tight check against a reference that mirrors the kernel arithmetic.
    ref_mirror = _reference_forward_mirror(x, weights, biases)
    assert bool(jnp.allclose(out, ref_mirror, atol=2e-3, rtol=2e-3))

    # Loose check against the exact f32 PyTorch-semantics reference
    # (bf16 matmul / activation tolerance).
    ref_f32 = _reference_forward_f32(x, weights, biases)
    assert bool(jnp.allclose(out, ref_f32, atol=3e-2, rtol=3e-2))

    # Softmax rows sum to 1 (exact reciprocal in the epilogue).
    assert bool(jnp.allclose(jnp.sum(out, axis=1), jnp.ones((batch,)), atol=1e-4))

    print("KERNEL_OK")
</pallas_src>

<mosaic_0001>
module attributes {stable_mosaic.version = 11 : i64} {
  func.func @_hidden_kernel(%arg0: i32, %arg1: memref<8x128xbf16, #tpu.memory_space<vmem>>, %arg2: memref<128x128xbf16, #tpu.memory_space<vmem>>, %arg3: memref<8x128xbf16, #tpu.memory_space<vmem>>, %arg4: memref<1x128xf32, #tpu.memory_space<vmem>>, %arg5: memref<1x128xf32, #tpu.memory_space<vmem>>) attributes {dimension_semantics = [#tpu.dimension_semantics<arbitrary>], iteration_bounds = array<i64: 1>, scalar_prefetch = 0 : i64, scratch_operands = 0 : i64, tpu.core_type = #tpu.core_type<tc>, window_params = [{transform_indices = @transform_0, window_bounds = array<i64: 8, 128>}, {pipeline_mode = #tpu.pipeline_mode<synchronous>, transform_indices = @transform_1, window_bounds = array<i64: 128, 128>}, {transform_indices = @transform_2, window_bounds = array<i64: 8, 128>}, {pipeline_mode = #tpu.pipeline_mode<synchronous>, transform_indices = @transform_3, window_bounds = array<i64: 1, 128>}, {pipeline_mode = #tpu.pipeline_mode<synchronous>, transform_indices = @transform_4, window_bounds = array<i64: 1, 128>}]} {
    %c0 = arith.constant 0 : index
    %c0_0 = arith.constant 0 : index
    %0 = vector.load %arg1[%c0, %c0_0] : memref<8x128xbf16, #tpu.memory_space<vmem>>, vector<8x128xbf16>
    %c0_1 = arith.constant 0 : index
    %c0_2 = arith.constant 0 : index
    %1 = vector.load %arg2[%c0_1, %c0_2] : memref<128x128xbf16, #tpu.memory_space<vmem>>, vector<128x128xbf16>
    %cst = arith.constant dense<0.000000e+00> : vector<8x128xf32>
    %2 = tpu.matmul %0, %1, %cst {dimension_numbers = #tpu.dot_dimension_numbers<[1], [0], [0], [1], [0, 0, 1, 1], [], []>} : vector<8x128xbf16>, vector<128x128xbf16>, vector<8x128xf32> -> vector<8x128xf32>
    %3 = arith.truncf %2 : vector<8x128xf32> to vector<8x128xbf16>
    %c0_3 = arith.constant 0 : index
    %c0_4 = arith.constant 0 : index
    %4 = vector.load %arg3[%c0_3, %c0_4] : memref<8x128xbf16, #tpu.memory_space<vmem>>, vector<8x128xbf16>
    tpu.vector_store %arg3[%c0_3, %c0_4], %3 {strides = array<i32>} : memref<8x128xbf16, #tpu.memory_space<vmem>>, vector<8x128xbf16>,
    %5 = tpu.iota {dimensions = array<i32: 1>} : vector<1x8xi32>
    %c8_i32 = arith.constant 8 : i32
    %6 = arith.muli %arg0, %c8_i32 : i32
    %7 = vector.broadcast %6 : i32 to vector<1x8xi32>
    %8 = arith.addi %5, %7 : vector<1x8xi32>
    %c8_i32_5 = arith.constant 8 : i32
    %9 = vector.broadcast %c8_i32_5 : i32 to vector<1x8xi32>
    %10 = arith.cmpi slt, %8, %9 : vector<1x8xi32>
    %11 = arith.extui %10 : vector<1x8xi1> to vector<1x8xi32>
    %12 = arith.sitofp %11 : vector<1x8xi32> to vector<1x8xf32>
    %c0_i32 = arith.constant 0 : i32
    %13 = arith.cmpi eq, %arg0, %c0_i32 : i32
    %14 = arith.extui %13 : i1 to i32
    %c0_i32_6 = arith.constant 0 : i32
    %15 = arith.cmpi ne, %14, %c0_i32_6 : i32
    scf.if %15 {
      %cst_19 = arith.constant 0.000000e+00 : f32
      %29 = vector.broadcast %cst_19 : f32 to vector<1x128xf32>
      %c0_20 = arith.constant 0 : index
      %c0_21 = arith.constant 0 : index
      %30 = vector.load %arg4[%c0_20, %c0_21] : memref<1x128xf32, #tpu.memory_space<vmem>>, vector<1x128xf32>
      tpu.vector_store %arg4[%c0_20, %c0_21], %29 {strides = array<i32>} : memref<1x128xf32, #tpu.memory_space<vmem>>, vector<1x128xf32>,
      %cst_22 = arith.constant 0.000000e+00 : f32
      %31 = vector.broadcast %cst_22 : f32 to vector<1x128xf32>
      %c0_23 = arith.constant 0 : index
      %c0_24 = arith.constant 0 : index
      %32 = vector.load %arg5[%c0_23, %c0_24] : memref<1x128xf32, #tpu.memory_space<vmem>>, vector<1x128xf32>
      tpu.vector_store %arg5[%c0_23, %c0_24], %31 {strides = array<i32>} : memref<1x128xf32, #tpu.memory_space<vmem>>, vector<1x128xf32>,
    } else {
    }
    %c0_7 = arith.constant 0 : index
    %c0_8 = arith.constant 0 : index
    %16 = vector.load %arg4[%c0_7, %c0_8] : memref<1x128xf32, #tpu.memory_space<vmem>>, vector<1x128xf32>
    %cst_9 = arith.constant dense<0.000000e+00> : vector<1x128xf32>
    %17 = tpu.matmul %12, %2, %cst_9 {dimension_numbers = #tpu.dot_dimension_numbers<[1], [0], [0], [1], [0, 0, 1, 1], [], []>} : vector<1x8xf32>, vector<8x128xf32>, vector<1x128xf32> -> vector<1x128xf32>
    %cst_10 = arith.constant 1.250000e-01 : f32
    %18 = vector.broadcast %cst_10 : f32 to vector<1x128xf32>
    %19 = arith.mulf %17, %18 : vector<1x128xf32>
    %20 = arith.addf %16, %19 : vector<1x128xf32>
    %c0_11 = arith.constant 0 : index
    %c0_12 = arith.constant 0 : index
    %21 = vector.load %arg4[%c0_11, %c0_12] : memref<1x128xf32, #tpu.memory_space<vmem>>, vector<1x128xf32>
    tpu.vector_store %arg4[%c0_11, %c0_12], %20 {strides = array<i32>} : memref<1x128xf32, #tpu.memory_space<vmem>>, vector<1x128xf32>,
    %c0_13 = arith.constant 0 : index
    %c0_14 = arith.constant 0 : index
    %22 = vector.load %arg5[%c0_13, %c0_14] : memref<1x128xf32, #tpu.memory_space<vmem>>, vector<1x128xf32>
    %23 = arith.mulf %2, %2 : vector<8x128xf32>
    %cst_15 = arith.constant dense<0.000000e+00> : vector<1x128xf32>
    %24 = tpu.matmul %12, %23, %cst_15 {dimension_numbers = #tpu.dot_dimension_numbers<[1], [0], [0], [1], [0, 0, 1, 1], [], []>} : vector<1x8xf32>, vector<8x128xf32>, vector<1x128xf32> -> vector<1x128xf32>
    %cst_16 = arith.constant 1.250000e-01 : f32
    %25 = vector.broadcast %cst_16 : f32 to vector<1x128xf32>
    %26 = arith.mulf %24, %25 : vector<1x128xf32>
    %27 = arith.addf %22, %26 : vector<1x128xf32>
    %c0_17 = arith.constant 0 : index
    %c0_18 = arith.constant 0 : index
    %28 = vector.load %arg5[%c0_17, %c0_18] : memref<1x128xf32, #tpu.memory_space<vmem>>, vector<1x128xf32>
    tpu.vector_store %arg5[%c0_17, %c0_18], %27 {strides = array<i32>} : memref<1x128xf32, #tpu.memory_space<vmem>>, vector<1x128xf32>,
    return
  }
  func.func @transform_0(%arg0: i32) -> (i32, i32) {
    %c0_i32 = arith.constant 0 : i32
    %c0_i32_0 = arith.constant 0 : i32
    return %arg0, %c0_i32 : i32, i32
  }
  func.func @transform_1(%arg0: i32) -> (i32, i32) {
    %c0_i32 = arith.constant 0 : i32
    %c0_i32_0 = arith.constant 0 : i32
    %c0_i32_1 = arith.constant 0 : i32
    return %c0_i32, %c0_i32_0 : i32, i32
  }
  func.func @transform_2(%arg0: i32) -> (i32, i32) {
    %c0_i32 = arith.constant 0 : i32
    %c0_i32_0 = arith.constant 0 : i32
    return %arg0, %c0_i32 : i32, i32
  }
  func.func @transform_3(%arg0: i32) -> (i32, i32) {
    %c0_i32 = arith.constant 0 : i32
    %c0_i32_0 = arith.constant 0 : i32
    %c0_i32_1 = arith.constant 0 : i32
    return %c0_i32, %c0_i32_0 : i32, i32
  }
  func.func @transform_4(%arg0: i32) -> (i32, i32) {
    %c0_i32 = arith.constant 0 : i32
    %c0_i32_0 = arith.constant 0 : i32
    %c0_i32_1 = arith.constant 0 : i32
    return %c0_i32, %c0_i32_0 : i32, i32
  }
}

module attributes {stable_mosaic.version = 11 : i64} {
  func.func @_final_kernel(%arg0: i32, %arg1: memref<1x128xf32, #tpu.memory_space<vmem>>, %arg2: memref<1x128xf32, #tpu.memory_space<vmem>>, %arg3: memref<8x128xbf16, #tpu.memory_space<vmem>>, %arg4: memref<128x128xbf16, #tpu.memory_space<vmem>>, %arg5: memref<1x128xf32, #tpu.memory_space<vmem>>, %arg6: memref<8x128xf32, #tpu.memory_space<vmem>>) attributes {dimension_semantics = [#tpu.dimension_semantics<parallel>], iteration_bounds = array<i64: 1>, scalar_prefetch = 0 : i64, scratch_operands = 0 : i64, tpu.core_type = #tpu.core_type<tc>, window_params = [{pipeline_mode = #tpu.pipeline_mode<synchronous>, transform_indices = @transform_0, window_bounds = array<i64: 1, 128>}, {pipeline_mode = #tpu.pipeline_mode<synchronous>, transform_indices = @transform_1, window_bounds = array<i64: 1, 128>}, {transform_indices = @transform_2, window_bounds = array<i64: 8, 128>}, {pipeline_mode = #tpu.pipeline_mode<synchronous>, transform_indices = @transform_3, window_bounds = array<i64: 128, 128>}, {pipeline_mode = #tpu.pipeline_mode<synchronous>, transform_indices = @transform_4, window_bounds = array<i64: 1, 128>}, {transform_indices = @transform_5, window_bounds = array<i64: 8, 128>}]} {
    %c0 = arith.constant 0 : index
    %c0_0 = arith.constant 0 : index
    %0 = vector.load %arg3[%c0, %c0_0] : memref<8x128xbf16, #tpu.memory_space<vmem>>, vector<8x128xbf16>
    %c0_1 = arith.constant 0 : index
    %c0_2 = arith.constant 0 : index
    %1 = vector.load %arg1[%c0_1, %c0_2] : memref<1x128xf32, #tpu.memory_space<vmem>>, vector<1x128xf32>
    %c0_3 = arith.constant 0 : index
    %c0_4 = arith.constant 0 : index
    %2 = vector.load %arg2[%c0_3, %c0_4] : memref<1x128xf32, #tpu.memory_space<vmem>>, vector<1x128xf32>
    %3 = arith.mulf %1, %1 : vector<1x128xf32>
    %4 = arith.subf %2, %3 : vector<1x128xf32>
    %cst = arith.constant 9.99999974E-6 : f32
    %5 = vector.broadcast %cst : f32 to vector<1x128xf32>
    %6 = arith.addf %4, %5 : vector<1x128xf32>
    %7 = math.rsqrt %6 : vector<1x128xf32>
    %8 = arith.extf %0 : vector<8x128xbf16> to vector<8x128xf32>
    %9 = vector.broadcast %1 : vector<1x128xf32> to vector<8x128xf32>
    %10 = arith.subf %8, %9 : vector<8x128xf32>
    %11 = vector.broadcast %7 : vector<1x128xf32> to vector<8x128xf32>
    %12 = arith.mulf %10, %11 : vector<8x128xf32>
    %cst_5 = arith.constant 0.000000e+00 : f32
    %13 = vector.broadcast %cst_5 : f32 to vector<8x128xf32>
    %14 = arith.maximumf %12, %13 : vector<8x128xf32>
    %15 = arith.truncf %14 : vector<8x128xf32> to vector<8x128xbf16>
    %c0_6 = arith.constant 0 : index
    %c0_7 = arith.constant 0 : index
    %16 = vector.load %arg4[%c0_6, %c0_7] : memref<128x128xbf16, #tpu.memory_space<vmem>>, vector<128x128xbf16>
    %cst_8 = arith.constant dense<0.000000e+00> : vector<8x128xf32>
    %17 = tpu.matmul %15, %16, %cst_8 {dimension_numbers = #tpu.dot_dimension_numbers<[1], [0], [0], [1], [0, 0, 1, 1], [], []>} : vector<8x128xbf16>, vector<128x128xbf16>, vector<8x128xf32> -> vector<8x128xf32>
    %c0_9 = arith.constant 0 : index
    %c0_10 = arith.constant 0 : index
    %18 = vector.load %arg5[%c0_9, %c0_10] : memref<1x128xf32, #tpu.memory_space<vmem>>, vector<1x128xf32>
    %19 = vector.broadcast %18 : vector<1x128xf32> to vector<8x128xf32>
    %20 = arith.addf %17, %19 : vector<8x128xf32>
    %cst_11 = arith.constant dense<0xFF800000> : vector<8xf32>
    %21 = vector.multi_reduction <maximumf>, %20, %cst_11 [1] : vector<8x128xf32> to vector<8xf32>
    %22 = vector.shape_cast %21 : vector<8xf32> to vector<8x1xf32>
    %23 = vector.broadcast %22 : vector<8x1xf32> to vector<8x128xf32>
    %24 = arith.subf %20, %23 : vector<8x128xf32>
    %25 = math.exp %24 : vector<8x128xf32>
    %cst_12 = arith.constant dense<0.000000e+00> : vector<8xf32>
    %26 = vector.multi_reduction <add>, %25, %cst_12 [1] : vector<8x128xf32> to vector<8xf32>
    %27 = vector.shape_cast %26 : vector<8xf32> to vector<8x1xf32>
    %28 = tpu.reciprocal %27 : vector<8x1xf32> -> vector<8x1xf32>
    %29 = vector.broadcast %28 : vector<8x1xf32> to vector<8x128xf32>
    %30 = arith.mulf %25, %29 : vector<8x128xf32>
    %c0_13 = arith.constant 0 : index
    %c0_14 = arith.constant 0 : index
    %31 = vector.load %arg6[%c0_13, %c0_14] : memref<8x128xf32, #tpu.memory_space<vmem>>, vector<8x128xf32>
    tpu.vector_store %arg6[%c0_13, %c0_14], %30 {strides = array<i32>} : memref<8x128xf32, #tpu.memory_space<vmem>>, vector<8x128xf32>,
    return
  }
  func.func @transform_0(%arg0: i32) -> (i32, i32) {
    %c0_i32 = arith.constant 0 : i32
    %c0_i32_0 = arith.constant 0 : i32
    %c0_i32_1 = arith.constant 0 : i32
    return %c0_i32, %c0_i32_0 : i32, i32
  }
  func.func @transform_1(%arg0: i32) -> (i32, i32) {
    %c0_i32 = arith.constant 0 : i32
    %c0_i32_0 = arith.constant 0 : i32
    %c0_i32_1 = arith.constant 0 : i32
    return %c0_i32, %c0_i32_0 : i32, i32
  }
  func.func @transform_2(%arg0: i32) -> (i32, i32) {
    %c0_i32 = arith.constant 0 : i32
    %c0_i32_0 = arith.constant 0 : i32
    return %arg0, %c0_i32 : i32, i32
  }
  func.func @transform_3(%arg0: i32) -> (i32, i32) {
    %c0_i32 = arith.constant 0 : i32
    %c0_i32_0 = arith.constant 0 : i32
    %c0_i32_1 = arith.constant 0 : i32
    return %c0_i32, %c0_i32_0 : i32, i32
  }
  func.func @transform_4(%arg0: i32) -> (i32, i32) {
    %c0_i32 = arith.constant 0 : i32
    %c0_i32_0 = arith.constant 0 : i32
    %c0_i32_1 = arith.constant 0 : i32
    return %c0_i32, %c0_i32_0 : i32, i32
  }
  func.func @transform_5(%arg0: i32) -> (i32, i32) {
    %c0_i32 = arith.constant 0 : i32
    %c0_i32_0 = arith.constant 0 : i32
    return %arg0, %c0_i32 : i32, i32
  }
}

</mosaic_0001>

<bundles_post_ra>
// kernel: forward.2
= control target key start
LH: loop header
LB: loop body
LE: loop exit
PB: predicated region body
PF: predicated region fallthrough
CT: control target
= control target key end

     0   :  { %10 = vsyncpa [#allocation3], 0  ;;  %s407_s15 = smov [#allocation2]   ;;  %s476_s0 = inlined_call_operand.vmem [shape: bf16[8,128], index: 0, kind: input, shape index: {}]   ;;  %s477_s1 = inlined_call_operand.hbm [shape: bf16[128,128], index: 1, kind: input, shape index: {}]   ;;  %s478_s2 = inlined_call_operand.vmem [shape: bf16[8,128], index: 2, kind: output, shape index: {0}]   ;;  %s479_s3 = inlined_call_operand.vmem [shape: f32[1,128], index: 3, kind: output, shape index: {1}]   ;;  %s480_s4 = inlined_call_operand.vmem [shape: f32[1,128], index: 4, kind: output, shape index: {2}]  }
   0x1   :  { %s18_s16 = sshll.u32 %s407_s15, 4  ;;  %s383_s19 = scalar_lea.hbm %s477_s1, 1024  ;;  %s19_s16 = int_to_ptr.vmem [resolvable:$true] %s18_s16 }
   0x2   :  { %p384_p0 = scmp.ne.s32.totalorder %s477_s1, %s383_s19  ;;  %p387_p1 = scmp.lt.u32.totalorder %s383_s19, %s477_s1 }
   0x4   :  { %p389_p2 = pnand %p387_p1, %p384_p0 }
   0x6   :  { %392 = shalt.err (!%p389_p2)
}
   0x7   :  { %s393_s24 = scalar_lea.vmem %s19_s16, 1024  ;;  %p398_p4 = scmp.lt.s32.totalorder %s19_s16, %s19_s16 }
   0x8   :  { %p394_p3 = scmp.ne.s32.totalorder %s19_s16, %s393_s24  ;;  %p399_p5 = scmp.lt.s32.totalorder %s393_s24, %s393_s24 }
   0xa   :  { %p400_p6 = por %p399_p5, %p398_p4 }
   0xc   :  { %p401_p7 = pnand %p400_p6, %p394_p3 }
   0xe   :  { %404 = shalt.err (!%p401_p7)
}
   0xf   :  { %s408_s25 = smov 64   ;;  %s409_s26 = smov 4  }
  0x10   :  { %24 = dma.hbm_to_vmem [thread:$0]  %s477_s1, 1024, %s19_s16, [#allocation3], %s408_s25, %s408_s25, %s409_s26  }
  0x11   :  { %405 = dma.done.wait [#allocation3], 1024  }
  0x12   :  { %406 = vsyncadd [#allocation3], 4294966272  ;;  %v410_v0 = vmov 0.0   ;;  %vm411_vm0 = vmmov 0   ;;  %v375_v1 = vld [vmem:[#allocation2] sm:$0xff]   ;;  %v376_v2 = vld [vmem:[#allocation2 + $0x8] sm:$0xff]   ;;  %v136_v10 = vlaneseq }
  0x13   :  { %340 = vmatprep.subr.bf16.mxu0 %v410_v0  ;;  %148 = vst [vmem:[%s479_s3] sm:$0x1] %v410_v0  ;;  %149 = vst [vmem:[%s480_s4] sm:$0x1] %v410_v0  ;;  %356 = vmatprep.mubr.msk.bf16.mxu0 %vm411_vm0, %v410_v0  ;;  %v377_v3 = vld [vmem:[#allocation2 + $0x10] sm:$0xff]   ;;  %v378_v4 = vld [vmem:[#allocation2 + $0x18] sm:$0xff]   ;;  %vm151_vm2 = vcmask 64512  }
  0x14   :  { %360 = vmatprep.subr.mxu1 %v410_v0  ;;  %362 = vmatprep.mubr.msk.f32.mxu1 %vm411_vm0, %v410_v0  ;;  %v379_v5 = vld [vmem:[#allocation2 + $0x20] sm:$0xff]   ;;  %v380_v6 = vld [vmem:[#allocation2 + $0x28] sm:$0xff]   ;;  %v381_v7 = vld [vmem:[#allocation2 + $0x30] sm:$0xff]   ;;  %v137_v11 = vand.u32 127, %v136_v10 }
  0x15   :  { %341 = vmatpush3.bf16.msra.mxu0 %v375_v1  ;;  %v382_v8 = vld [vmem:[#allocation2 + $0x38] sm:$0xff]   ;;  %v29_v9 = vld [vmem:[%s476_s0] sm:$0xf] }
  0x16   :  { %342 = vmatprep.subr.bf16.mxu0 %v410_v0  ;;  %vm141_vm1 = vcmp.lt.s32.totalorder %v137_v11, 8 }
  0x17   :  { %v324_v12 = vsel %vm141_vm1, 1.0, %v410_v0 }
  0x19   :  { %343 = vmatpush3.bf16.msra.mxu0 %v376_v2 }
  0x1a   :  { %344 = vmatprep.subr.bf16.mxu0 %v410_v0  ;;  %v150_v19 = vld [vmem:[%s479_s3] sm:$0x1] }
  0x1b   :  { %v228_v24 = vld [vmem:[%s480_s4] sm:$0x1] }
  0x1d   :  { %345 = vmatpush3.bf16.msra.mxu0 %v377_v3 }
  0x1e   :  { %346 = vmatprep.subr.bf16.mxu0 %v410_v0 }
  0x21   :  { %347 = vmatpush3.bf16.msra.mxu0 %v378_v4 }
  0x22   :  { %348 = vmatprep.subr.bf16.mxu0 %v410_v0 }
  0x25   :  { %349 = vmatpush3.bf16.msra.mxu0 %v379_v5 }
  0x26   :  { %350 = vmatprep.subr.bf16.mxu0 %v410_v0 }
  0x29   :  { %351 = vmatpush3.bf16.msra.mxu0 %v380_v6 }
  0x2a   :  { %352 = vmatprep.subr.bf16.mxu0 %v410_v0 }
  0x2d   :  { %353 = vmatpush3.bf16.msra.mxu0 %v381_v7 }
  0x2e   :  { %354 = vmatprep.subr.bf16.mxu0 %v410_v0 }
  0x31   :  { %355 = vmatpush3.bf16.msra.mxu0 %v382_v8 }
  0x34   :  { %357 = vmatmul.mubr.bf16.vlgmr.msra.gmra.mrb[0].mxu0 %v29_v9 }
 0x107   :  { %v128_v13 = vpop.f32.mrb[0].mxu0 }
 0x108   :  { %v134_v14 = vpack.c.bf16 %v128_v13, %v128_v13  ;;  %v229_v15 = vmul.f32 %v128_v13, %v128_v13  ;;  %v358_v16 = vpop.f32.mrb[1].mxu0  ;;  %361 = vmatpush3.msra.mxu1 %v128_v13 }
 0x109   :  { %v131_v17 = vpop.f32.mrb[2].mxu0  ;;  %363 = vmatmul.mubr.msk.f32.vlgmr.msra.gmra.mrb[0].mxu1 %vm151_vm2, %v324_v12  ;;  %365 = vmatprep.subr.mxu1 %v410_v0 }
 0x10a   :  { %135 = vst [vmem:[%s478_s2] sm:$0xf] %v134_v14  ;;  %v359_v18 = vpop.f32.mrb[3].mxu0  ;;  %366 = vmatpush3.msra.mxu1 %v229_v15  ;;  %367 = vmatprep.mubr.msk.f32.mxu1 %vm411_vm0, %v410_v0 }
 0x10d   :  { %368 = vmatmul.mubr.msk.f32.vlgmr.msra.gmra.mrb[2].mxu1 %vm151_vm2, %v324_v12 }
 0x1dc   :  { %v221_v20 = vpop.f32.mrb[0].mxu1 }
 0x1dd   :  { %v225_v21 = vmul.f32 0.125, %v221_v20  ;;  %v364_v22 = vpop.f32.mrb[1].mxu1 }
 0x1df   :  { %v226_v23 = vadd.f32 %v225_v21, %v150_v19 }
 0x1e0   :  { %v296_v25 = vpop.f32.mrb[2].mxu1 }
 0x1e1   :  { %227 = vst [vmem:[%s479_s3] sm:$0x1] %v226_v23  ;;  %v300_v26 = vmul.f32 0.125, %v296_v25  ;;  %v369_v27 = vpop.f32.mrb[3].mxu1 }
 0x1e3   :  { %v301_v28 = vadd.f32 %v300_v26, %v228_v24 }
 0x1e5   :  { %302 = vst [vmem:[%s480_s4] sm:$0x1] %v301_v28 }
 0x1e6   :  { %315 = vsyncpa [#allocation3], 1 }

// kernel: forward.3
= control target key start
LH: loop header
LB: loop body
LE: loop exit
PB: predicated region body
PF: predicated region fallthrough
CT: control target
= control target key end

     0   :  { %v260_v1 = vmov 0.0   ;;  %vm261_vm0 = vmmov 0   ;;  %v31_v6 = vlaneseq  ;;  %s341_s0 = inlined_call_operand.vmem [shape: f32[1,128], index: 0, kind: input, shape index: {}]   ;;  %s342_s1 = inlined_call_operand.vmem [shape: f32[1,128], index: 1, kind: input, shape index: {}]   ;;  %s343_s2 = inlined_call_operand.vmem [shape: bf16[8,128], index: 2, kind: input, shape index: {}]   ;;  %s344_s3 = inlined_call_operand.vmem [shape: bf16[128,128], index: 3, kind: input, shape index: {}]   ;;  %s345_s4 = inlined_call_operand.vmem [shape: f32[1,128], index: 4, kind: input, shape index: {}]   ;;  %s346_s5 = inlined_call_operand.hbm [shape: f32[8,128], index: 5, kind: output, shape index: {}]  }
   0x1   :  { %v222_v0 = vld [vmem:[%s344_s3] sm:$0xff]   ;;  %199 = vmatprep.subr.bf16.mxu0 %v260_v1  ;;  %v223_v2 = vld [vmem:[%s344_s3 + $0x8] sm:$0xff]   ;;  %215 = vmatprep.mubr.msk.bf16.mxu0 %vm261_vm0, %v260_v1  ;;  %v224_v3 = vld [vmem:[%s344_s3 + $0x10] sm:$0xff]  }
   0x2   :  { %200 = vmatpush3.bf16.msra.mxu0 %v222_v0  ;;  %v23_v4 = vld [vmem:[%s341_s0] sm:$0x1] }
   0x3   :  { %201 = vmatprep.subr.bf16.mxu0 %v260_v1  ;;  %v24_v5 = vld [vmem:[%s342_s1] sm:$0x1]  ;;  %v25_v7 = vmul.f32 %v23_v4, %v23_v4 }
   0x6   :  { %202 = vmatpush3.bf16.msra.mxu0 %v223_v2 }
   0x7   :  { %203 = vmatprep.subr.bf16.mxu0 %v260_v1 }
   0x8   :  { %10 = vsyncpa [#allocation3], 0  ;;  %v225_v8 = vld [vmem:[%s344_s3 + $0x18] sm:$0xff]   ;;  %v26_v9 = vsub.f32 %v24_v5, %v25_v7  ;;  %v32_v10 = vshrl.u32 %v31_v6, 7  ;;  %v226_v12 = vld [vmem:[%s344_s3 + $0x20] sm:$0xff]  }
   0x9   :  { %v22_v14 = vld [vmem:[%s343_s2] sm:$0xf]  ;;  %v227_v15 = vld [vmem:[%s344_s3 + $0x28] sm:$0xff]   ;;  %v228_v18 = vld [vmem:[%s344_s3 + $0x30] sm:$0xff]  }
   0xa   :  { %204 = vmatpush3.bf16.msra.mxu0 %v224_v3  ;;  %v27_v11 = vadd.f32 1e-05, %v26_v9  ;;  %v33_v13 = vsub.s32 0, %v32_v10  ;;  %v29_v16 = vunpack.c.l.bf16 %v22_v14  ;;  %v229_v21 = vld [vmem:[%s344_s3 + $0x38] sm:$0xff]   ;;  %v181_v26 = vld [vmem:[%s345_s4] ss:$0 sm:$0xff] }
   0xb   :  { %205 = vmatprep.subr.bf16.mxu0 %v260_v1  ;;  %s262_s3 = smov [#allocation2]  }
   0xc   :  { %230 = vrsqrt.f32 %v27_v11  ;;  %v34_v17 = vrot.slane %v23_v4, %v33_v13  ;;  %s173_s14 = sshll.u32 %s262_s3, 4  ;;  %s174_s14 = int_to_ptr.vmem [resolvable:$true] %s173_s14 }
   0xd   :  { %s236_s4 = scalar_lea.vmem %s174_s14, 128  ;;  %p241_p1 = scmp.lt.s32.totalorder %s174_s14, %s174_s14 }
   0xe   :  { %206 = vmatpush3.bf16.msra.mxu0 %v225_v8  ;;  %v36_v19 = vsub.f32 %v29_v16, %v34_v17  ;;  %p237_p0 = scmp.ne.s32.totalorder %s174_s14, %s236_s4  ;;  %p242_p2 = scmp.lt.s32.totalorder %s236_s4, %s236_s4 }
   0xf   :  { %207 = vmatprep.subr.bf16.mxu0 %v260_v1 }
  0x10   :  { %p243_p3 = por %p242_p2, %p241_p1 }
  0x12   :  { %208 = vmatpush3.bf16.msra.mxu0 %v226_v12  ;;  %p244_p4 = pnand %p243_p3, %p237_p0 }
  0x13   :  { %209 = vmatprep.subr.bf16.mxu0 %v260_v1 }
  0x16   :  { %210 = vmatpush3.bf16.msra.mxu0 %v227_v15  ;;  %v231_v20 = vpop.eup %230 }
  0x17   :  { %211 = vmatprep.subr.bf16.mxu0 %v260_v1  ;;  %v41_v22 = vrot.slane %v231_v20, %v33_v13 }
  0x19   :  { %v43_v23 = vmul.f32 %v41_v22, %v36_v19 }
  0x1a   :  { %212 = vmatpush3.bf16.msra.mxu0 %v228_v18 }
  0x1b   :  { %213 = vmatprep.subr.bf16.mxu0 %v260_v1  ;;  %v44_v24 = vmax.f32 %v43_v23, 0.0 }
  0x1d   :  { %v45_v25 = vpack.c.bf16 %v44_v24, %v44_v24 }
  0x1e   :  { %214 = vmatpush3.bf16.msra.mxu0 %v229_v21 }
  0x21   :  { %216 = vmatmul.mubr.bf16.vlgmr.msra.gmra.mrb[0].mxu0 %v45_v25 }
  0xf4   :  { %v151_v27 = vpop.f32.mrb[0].mxu0 }
  0xf5   :  { %v152_v28 = vadd.f32 %v181_v26, %v151_v27  ;;  %v217_v29 = vpop.f32.mrb[1].mxu0 }
  0xf6   :  { %v154_v30 = vpop.f32.mrb[2].mxu0 }
  0xf7   :  { %157 = vmax.xlane.f32.xlu0 %v152_v28  ;;  %v218_v31 = vpop.f32.mrb[3].mxu0 }
 0x184   :  { %v158_v32 = vpop.xlane.xlu0 %157 }
 0x185   :  { %v159_v33 = vsub.f32 %v152_v28, %v158_v32 }
 0x187   :  { %v160_v34 = vmul.f32 1.442695, %v159_v33 }
 0x189   :  { %232 = vpow2.f32 %v160_v34 }
 0x193   :  { %v233_v35 = vpop.eup %232 }
 0x194   :  { %162 = vadd.xlane.f32.xlu0 %v233_v35 }
 0x221   :  { %v163_v36 = vpop.xlane.xlu0 %162 }
 0x222   :  { %234 = vrcp.f32 %v163_v36 }
 0x22c   :  { %v235_v37 = vpop.eup %234 }
 0x22d   :  { %v165_v38 = vmul.f32 %v235_v37, %v233_v35 }
 0x22f   :  { %166 = vst [vmem:[#allocation2] sm:$0xff] %v165_v38 }
 0x230   :  { %247 = shalt.err (!%p244_p4)
}
 0x231   :  { %s248_s17 = scalar_lea.hbm %s346_s5, 128 }
 0x232   :  { %p249_p5 = scmp.ne.s32.totalorder %s346_s5, %s248_s17  ;;  %p252_p6 = scmp.lt.u32.totalorder %s248_s17, %s346_s5 }
 0x234   :  { %p254_p7 = pnand %p252_p6, %p249_p5 }
 0x236   :  { %257 = shalt.err (!%p254_p7)
}
 0x237   :  { %176 = dma.vmem_to_hbm [thread:$0]  %s174_s14, 128, %s346_s5, [#allocation3]  }
 0x238   :  { %258 = dma.done.wait [#allocation3], 128  }
 0x239   :  { %259 = vsyncadd [#allocation3], 4294967168 }
 0x23a   :  { %180 = vsyncpa [#allocation3], 1 }

</bundles_post_ra>
